<compile_context>
chip_gen: v7x
topology: tpu7x:2x2x1
jax: 0.10.0
libtpu: 0.0.40
codegen_flags: <defaults>
</compile_context>

<pallas_src>
import numpy as np
import jax
import jax.numpy as jnp
from jax.experimental import pallas as pl
from jax.experimental.pallas import tpu as pltpu


# ----------------------------- kernel ---------------------------------------
def _make_detect_kernel(stride, rows_dec, n_rows, return_raw, approx_sigmoid):
    stride = float(stride)          # scalar literals only; no captured arrays
    rows_dec = int(rows_dec)
    n_rows = int(n_rows)

    def kernel(x_ref, w_ref, b_ref, meta_ref, g_ref, *out_refs):
        # x_ref   : (ch, ts)   input activations for one batch / spatial tile
        # w_ref   : (Np, ch)   1x1-conv weights (rows permuted + zero-padded)
        # b_ref   : (Np, 1)    conv bias (permuted + padded)
        # meta_ref: (Np, 4)    [is_xy, is_wh, is_x, anchor*stride] per row
        # g_ref   : (2, ts)    [xpos - 0.5 ; ypos - 0.5] per spatial column
        # out refs: optional raw (Np, ts) pre-sigmoid, then z (Np, ts) decoded
        if return_raw:
            raw_ref, z_ref = out_refs
        else:
            (z_ref,) = out_refs

        # 1x1 conv == matmul on the MXU; spatial axis is the lane dimension.
        acc = jnp.dot(w_ref[...], x_ref[...],
                      preferred_element_type=jnp.float32)
        acc = acc + b_ref[...]                    # (Np,1) lane-broadcast
        if return_raw:
            raw_ref[...] = acc

        if approx_sigmoid:
            sig = pl.reciprocal(1.0 + jnp.exp(-acc), approx=True)
        else:
            sig = jax.nn.sigmoid(acc)

        # Box decode only on the leading xy/wh block (rows were permuted so
        # the 4*na decode rows are first, padded up to a multiple of 8).
        is_xy = meta_ref[:rows_dec, 0:1] > 0.5
        is_wh = meta_ref[:rows_dec, 1:2] > 0.5
        is_x = meta_ref[:rows_dec, 2:3] > 0.5
        a_val = meta_ref[:rows_dec, 3:4]          # anchor*stride (1 elsewhere)

        sig_d = sig[:rows_dec, :]
        two_sig = sig_d * 2.0                     # hoisted, reused by xy & wh
        gridv = jnp.where(is_x, g_ref[0:1, :], g_ref[1:2, :])  # (rows_dec, ts)
        xy = (two_sig + gridv) * stride
        wh = two_sig * two_sig * a_val
        z_ref[:rows_dec, :] = jnp.where(is_xy, xy,
                                        jnp.where(is_wh, wh, sig_d))
        if rows_dec < n_rows:                     # conf rows: sigmoid only
            z_ref[rows_dec:, :] = sig[rows_dec:, :]

    return kernel


# --------------------------- tiling helpers -----------------------------------
def _default_max_tile():
    """Generation-aware spatial tile cap (lanes)."""
    try:
        kind = jax.devices()[0].device_kind.lower()
    except Exception:
        return 1024
    if "v6" in kind or "v7" in kind:
        return 2048      # working set ~13-24 MiB, fits v6e (128 MiB) / v7x (64 MiB)
    return 1024          # v5e: default scoped VMEM is only 16 MiB


def _spatial_tiling(S, max_tile, min_tiles=1):
    """Return (padded spatial extent, lane-dense spatial tile size)."""
    S_pad = max(128, ((S + 127) // 128) * 128)     # lane-dense output stores
    if S_pad <= max_tile:
        ts = S_pad
    else:
        # Prefer a 128-multiple tile >= max_tile/2 that divides the padded
        # extent (no wasted columns); otherwise pad up to a multiple of
        # max_tile (big-tile bandwidth dominates the few extra columns).
        ts = 0
        lo = max(512, max_tile // 2)
        for cand in range(max_tile, lo - 1, -128):
            if S_pad % cand == 0:
                ts = cand
                break
        if ts == 0:
            ts = max_tile
            S_pad = ((S_pad + ts - 1) // ts) * ts
    # v7x: guarantee >= min_tiles spatial steps so both TensorCores get work.
    while (S_pad // ts) < min_tiles and ts % 256 == 0:
        ts //= 2
    return S_pad, ts


# --------------------------- per-level wrapper --------------------------------
def detect_level(x_nchw, w, b, anchors_i, stride_i, nc, *,
                 compute_dtype=jnp.bfloat16, max_tile=None,
                 return_raw=True, approx_sigmoid=False):
    """One detection level: 1x1 conv + sigmoid + YOLO box decode."""
    bs, ch, ny, nx = x_nchw.shape
    anchors_np = np.asarray(anchors_i, np.float32)
    na = anchors_np.shape[0]
    no = nc + 5
    N = na * no
    Np = ((N + 7) // 8) * 8                        # sublane-pad output rows
    rows_dec = min(((4 * na + 7) // 8) * 8, Np)    # decode block (xy/wh rows)
    S = ny * nx
    if max_tile is None:
        max_tile = _default_max_tile()
    min_tiles = 2 if bs == 1 else 1                # keep 2 TCs busy on v7x
    S_pad, ts = _spatial_tiling(S, max_tile, min_tiles)

    # ---- glue: cheap reshapes only (NCHW fed directly, no NHWC transpose) ----
    x3 = x_nchw.reshape(bs, ch, S)
    if S_pad != S:
        x3 = jnp.pad(x3, ((0, 0), (0, 0), (0, S_pad - S)))
    x3 = x3.astype(compute_dtype)

    # ---- host-side row permutation: xy/wh rows first, then conf rows --------
    perm = np.array([a * no + j for a in range(na) for j in range(4)]
                    + [a * no + j for a in range(na) for j in range(4, no)],
                    dtype=np.int64)
    inv_perm = np.argsort(perm)                    # undoes the permutation

    w2 = np.zeros((Np, ch), np.float32)
    w2[:N] = np.asarray(w, np.float32).reshape(N, ch)[perm]
    b2 = np.zeros((Np, 1), np.float32)
    b2[:N, 0] = np.asarray(b, np.float32).reshape(N)[perm]

    meta_np = np.zeros((Np, 4), np.float32)
    meta_np[:, 3] = 1.0
    for a in range(na):
        for j in range(no):
            n = a * no + j
            meta_np[n, 0] = 1.0 if j < 2 else 0.0          # is_xy
            meta_np[n, 1] = 1.0 if 2 <= j < 4 else 0.0     # is_wh
            meta_np[n, 2] = 1.0 if j == 0 else 0.0         # x (vs y) column
            if j in (2, 3):
                meta_np[n, 3] = anchors_np[a, j - 2] * float(stride_i)
    meta_np[:N] = meta_np[:N][perm]

    wt = jnp.asarray(w2).astype(compute_dtype)
    b2d = jnp.asarray(b2)
    meta = jnp.asarray(meta_np)

    # ---- per-column (spatial) grid offsets, built host-side -----------------
    g_np = np.zeros((2, S_pad), np.float32)
    s_idx = np.arange(S)
    g_np[0, :S] = (s_idx % nx).astype(np.float32) - 0.5
    g_np[1, :S] = (s_idx // nx).astype(np.float32) - 0.5
    g = jnp.asarray(g_np)

    kernel = _make_detect_kernel(stride_i, rows_dec, Np, return_raw,
                                 approx_sigmoid)
    grid = (bs, S_pad // ts)
    in_bytes = jnp.dtype(compute_dtype).itemsize
    n_out = 2 if return_raw else 1
    cost = pl.CostEstimate(
        flops=2 * bs * S_pad * ch * Np + 8 * bs * S_pad * rows_dec,
        transcendentals=bs * S_pad * Np,
        bytes_accessed=(in_bytes * (bs * ch * S_pad + Np * ch)
                        + 4 * (n_out * bs * Np * S_pad + 2 * S_pad + 5 * Np)),
    )

    # Generous double-buffered working-set estimate -> explicit VMEM limit.
    vmem_est = (2 * ch * ts * in_bytes             # x tile
                + 2 * Np * ch * in_bytes           # weights
                + 2 * Np * 128 * 4                 # bias (lane-padded)
                + 2 * Np * 128 * 4                 # meta (lane-padded)
                + 2 * 8 * ts * 4                   # grid offsets
                + n_out * 2 * Np * ts * 4)         # outputs
    vmem_limit = int(min(max(32 << 20, 2 * vmem_est + (4 << 20)), 64 << 20))

    out_shapes = []
    out_specs = []
    if return_raw:
        out_shapes.append(jax.ShapeDtypeStruct((bs, Np, S_pad), jnp.float32))
        out_specs.append(pl.BlockSpec((None, Np, ts),
                                      lambda bi, si: (bi, 0, si)))
    out_shapes.append(jax.ShapeDtypeStruct((bs, Np, S_pad), jnp.float32))
    out_specs.append(pl.BlockSpec((None, Np, ts), lambda bi, si: (bi, 0, si)))

    outs = pl.pallas_call(
        kernel,
        out_shape=tuple(out_shapes),
        grid=grid,
        in_specs=[
            pl.BlockSpec((None, ch, ts), lambda bi, si: (bi, 0, si)),
            pl.BlockSpec((Np, ch), lambda bi, si: (0, 0)),
            pl.BlockSpec((Np, 1), lambda bi, si: (0, 0)),
            pl.BlockSpec((Np, 4), lambda bi, si: (0, 0)),
            pl.BlockSpec((2, ts), lambda bi, si: (0, si)),
        ],
        out_specs=tuple(out_specs),
        compiler_params=pltpu.CompilerParams(
            dimension_semantics=("parallel", "parallel"),
            vmem_limit_bytes=vmem_limit),
        cost_estimate=cost,
    )(x3, wt, b2d, meta, g)

    if return_raw:
        raw_p, z_p = outs
    else:
        (z_p,) = outs
        raw_p = None

    def _unpad(y):
        # Undo the row permutation (also drops the Np padding rows), then the
        # spatial padding.
        y = y[:, inv_perm, :]
        if S_pad != S:
            y = y[:, :, :S]
        return y

    z = _unpad(z_p)
    z3 = (z.reshape(bs, na, no, ny, nx)
            .transpose(0, 1, 3, 4, 2)
            .reshape(bs, na * ny * nx, no))                 # (bs, na*ny*nx, no)

    raw5 = None
    if return_raw:
        raw = _unpad(raw_p)
        raw5 = raw.reshape(bs, na, no, ny, nx).transpose(0, 1, 3, 4, 2)
    return raw5, z3


def detect_forward(xs, weights, biases, anchors, strides, nc, *,
                   compute_dtype=jnp.bfloat16, max_tile=None,
                   return_raw=True, approx_sigmoid=False):
    """Inference-mode Detect.forward (training=False, export=False):
    returns (cat(z, axis=1), [x[i] in (bs, na, ny, nx, no) layout]).
    With return_raw=False only cat(z, axis=1) is returned (pure-inference)."""
    zs, raws = [], []
    for i, x in enumerate(xs):
        raw5, z3 = detect_level(x, weights[i], biases[i], anchors[i],
                                strides[i], nc,
                                compute_dtype=compute_dtype,
                                max_tile=max_tile,
                                return_raw=return_raw,
                                approx_sigmoid=approx_sigmoid)
        raws.append(raw5)
        zs.append(z3)
    z_cat = jnp.concatenate(zs, axis=1)
    if return_raw:
        return z_cat, raws
    return z_cat


# ------------------------- float64 numpy reference ---------------------------
def ref_level_np(x_nchw, w, b, anchors_i, stride_i, nc):
    x = np.asarray(x_nchw, np.float64)
    w64 = np.asarray(w, np.float64)
    b64 = np.asarray(b, np.float64)
    anchors_np = np.asarray(anchors_i, np.float64)
    bs, ch, ny, nx = x.shape
    na = anchors_np.shape[0]
    no = nc + 5
    y = np.einsum('bchw,oc->bohw', x, w64.reshape(na * no, ch)) \
        + b64[None, :, None, None]
    y = y.reshape(bs, na, no, ny, nx).transpose(0, 1, 3, 4, 2)
    sig = 1.0 / (1.0 + np.exp(-y))
    yv, xv = np.meshgrid(np.arange(ny, dtype=np.float64),
                         np.arange(nx, dtype=np.float64), indexing='ij')
    grid = np.stack((xv, yv), 2)[None, None] - 0.5
    ag = (anchors_np * float(stride_i)).reshape(1, na, 1, 1, 2)
    xy = (sig[..., 0:2] * 2 + grid) * float(stride_i)
    wh = (sig[..., 2:4] * 2) ** 2 * ag
    conf = sig[..., 4:]
    z = np.concatenate((xy, wh, conf), -1).reshape(bs, na * ny * nx, no)
    return y, z


if __name__ == "__main__":
    key = jax.random.PRNGKey(0)

    # Detect(nc=3, anchors = 3 levels x 3 anchors, ch=(4, 8, 16))
    nc = 3
    no = nc + 5
    anchors = np.array(
        [[[10., 13.], [16., 30.], [33., 23.]],
         [[30., 61.], [62., 45.], [59., 119.]],
         [[116., 90.], [156., 198.], [373., 326.]]], np.float32)  # (nl, na, 2)
    nl, na, _ = anchors.shape
    strides = [8.0, 16.0, 32.0]
    ch = (4, 8, 16)
    spatial = [(16, 16), (8, 8), (4, 4)]
    bs = 2

    # deterministic inputs / parameters
    keys = jax.random.split(key, 3 * nl)
    xs, weights, biases = [], [], []
    for i in range(nl):
        ny, nx = spatial[i]
        xs.append(jax.random.normal(keys[3 * i], (bs, ch[i], ny, nx), jnp.float32))
        weights.append(0.1 * jax.random.normal(keys[3 * i + 1],
                                               (na * no, ch[i], 1, 1), jnp.float32))
        biases.append(0.1 * jax.random.normal(keys[3 * i + 2], (na * no,),
                                              jnp.float32))

    # float64 numpy reference of the PyTorch semantics
    z_refs, raw_refs = [], []
    for i in range(nl):
        r, z = ref_level_np(xs[i], weights[i], biases[i], anchors[i],
                            strides[i], nc)
        raw_refs.append(r)
        z_refs.append(z)
    z_ref_cat = np.concatenate(z_refs, axis=1)

    # --- exact path: f32 matmul inputs, tight tolerance ----------------------
    z_cat, raw_list = detect_forward(xs, weights, biases, anchors, strides, nc,
                                     compute_dtype=jnp.float32)
    z_cat = jax.block_until_ready(z_cat)
    raw_list = [jax.block_until_ready(r) for r in raw_list]

    assert z_cat.shape == (bs, sum(na * h * w for (h, w) in spatial), no)
    np.testing.assert_allclose(np.asarray(z_cat), z_ref_cat,
                               rtol=2e-3, atol=2e-3)
    for i in range(nl):
        np.testing.assert_allclose(np.asarray(raw_list[i]), raw_refs[i],
                                   rtol=2e-3, atol=2e-3)

    # --- default path: bf16 matmul operands (f32 accumulation/decode) --------
    z_bf, raw_bf = detect_forward(xs, weights, biases, anchors, strides, nc)
    z_bf = jax.block_until_ready(z_bf)
    raw_bf = [jax.block_until_ready(r) for r in raw_bf]
    np.testing.assert_allclose(np.asarray(z_bf), z_ref_cat,
                               rtol=1e-1, atol=1e-1)
    for i in range(nl):
        np.testing.assert_allclose(np.asarray(raw_bf[i]), raw_refs[i],
                                   rtol=1e-1, atol=1e-1)

    print("KERNEL_OK")
</pallas_src>

<mosaic_0001>
module attributes {stable_mosaic.version = 11 : i64} {
  func.func @kernel(%arg0: i32, %arg1: i32, %arg2: memref<1x4x256xf32, #tpu.memory_space<vmem>>, %arg3: memref<24x4xf32, #tpu.memory_space<vmem>>, %arg4: memref<24x1xf32, #tpu.memory_space<vmem>>, %arg5: memref<24x4xf32, #tpu.memory_space<vmem>>, %arg6: memref<2x256xf32, #tpu.memory_space<vmem>>, %arg7: memref<1x24x256xf32, #tpu.memory_space<vmem>>, %arg8: memref<1x24x256xf32, #tpu.memory_space<vmem>>) attributes {dimension_semantics = [#tpu.dimension_semantics<parallel>, #tpu.dimension_semantics<parallel>], iteration_bounds = array<i64: 2, 1>, scalar_prefetch = 0 : i64, scratch_operands = 0 : i64, tpu.core_type = #tpu.core_type<tc>, window_params = [{transform_indices = @transform_0, window_bounds = array<i64: 1, 4, 256>}, {pipeline_mode = #tpu.pipeline_mode<synchronous>, transform_indices = @transform_1, window_bounds = array<i64: 24, 4>}, {pipeline_mode = #tpu.pipeline_mode<synchronous>, transform_indices = @transform_2, window_bounds = array<i64: 24, 1>}, {pipeline_mode = #tpu.pipeline_mode<synchronous>, transform_indices = @transform_3, window_bounds = array<i64: 24, 4>}, {transform_indices = @transform_4, window_bounds = array<i64: 2, 256>}, {transform_indices = @transform_5, window_bounds = array<i64: 1, 24, 256>}, {transform_indices = @transform_6, window_bounds = array<i64: 1, 24, 256>}]} {
    %c0 = arith.constant 0 : index
    %c0_0 = arith.constant 0 : index
    %0 = vector.load %arg3[%c0, %c0_0] : memref<24x4xf32, #tpu.memory_space<vmem>>, vector<24x4xf32>
    %c0_1 = arith.constant 0 : index
    %c0_2 = arith.constant 0 : index
    %c0_3 = arith.constant 0 : index
    %1 = vector.load %arg2[%c0_1, %c0_2, %c0_3] : memref<1x4x256xf32, #tpu.memory_space<vmem>>, vector<1x4x256xf32>
    %2 = vector.shape_cast %1 : vector<1x4x256xf32> to vector<4x256xf32>
    %cst = arith.constant dense<0.000000e+00> : vector<24x256xf32>
    %3 = tpu.matmul %0, %2, %cst {dimension_numbers = #tpu.dot_dimension_numbers<[1], [0], [0], [1], [0, 0, 1, 1], [], []>} : vector<24x4xf32>, vector<4x256xf32>, vector<24x256xf32> -> vector<24x256xf32>
    %c0_4 = arith.constant 0 : index
    %c0_5 = arith.constant 0 : index
    %4 = vector.load %arg4[%c0_4, %c0_5] : memref<24x1xf32, #tpu.memory_space<vmem>>, vector<24x1xf32>
    %5 = vector.broadcast %4 : vector<24x1xf32> to vector<24x256xf32>
    %6 = arith.addf %3, %5 : vector<24x256xf32>
    %c0_6 = arith.constant 0 : index
    %c0_7 = arith.constant 0 : index
    %c0_8 = arith.constant 0 : index
    %7 = vector.load %arg7[%c0_6, %c0_7, %c0_8] : memref<1x24x256xf32, #tpu.memory_space<vmem>>, vector<1x24x256xf32>
    %8 = vector.shape_cast %7 : vector<1x24x256xf32> to vector<24x256xf32>
    %9 = vector.shape_cast %6 : vector<24x256xf32> to vector<1x24x256xf32>
    tpu.vector_store %arg7[%c0_6, %c0_7, %c0_8], %9 {strides = array<i32>} : memref<1x24x256xf32, #tpu.memory_space<vmem>>, vector<1x24x256xf32>,
    %10 = arith.negf %6 : vector<24x256xf32>
    %11 = math.exp %10 : vector<24x256xf32>
    %cst_9 = arith.constant 1.000000e+00 : f32
    %12 = vector.broadcast %cst_9 : f32 to vector<24x256xf32>
    %13 = arith.addf %12, %11 : vector<24x256xf32>
    %14 = arith.divf %12, %13 : vector<24x256xf32>
    %c0_10 = arith.constant 0 : index
    %c0_11 = arith.constant 0 : index
    %15 = vector.load %arg5[%c0_10, %c0_11] : memref<24x4xf32, #tpu.memory_space<vmem>>, vector<16x1xf32>
    %cst_12 = arith.constant 5.000000e-01 : f32
    %16 = vector.broadcast %cst_12 : f32 to vector<16x1xf32>
    %17 = arith.cmpf ogt, %15, %16 : vector<16x1xf32>
    %c0_13 = arith.constant 0 : index
    %c1 = arith.constant 1 : index
    %18 = vector.load %arg5[%c0_13, %c1] : memref<24x4xf32, #tpu.memory_space<vmem>>, vector<16x1xf32>
    %cst_14 = arith.constant 5.000000e-01 : f32
    %19 = vector.broadcast %cst_14 : f32 to vector<16x1xf32>
    %20 = arith.cmpf ogt, %18, %19 : vector<16x1xf32>
    %c0_15 = arith.constant 0 : index
    %c2 = arith.constant 2 : index
    %21 = vector.load %arg5[%c0_15, %c2] : memref<24x4xf32, #tpu.memory_space<vmem>>, vector<16x1xf32>
    %cst_16 = arith.constant 5.000000e-01 : f32
    %22 = vector.broadcast %cst_16 : f32 to vector<16x1xf32>
    %23 = arith.cmpf ogt, %21, %22 : vector<16x1xf32>
    %c0_17 = arith.constant 0 : index
    %c3 = arith.constant 3 : index
    %24 = vector.load %arg5[%c0_17, %c3] : memref<24x4xf32, #tpu.memory_space<vmem>>, vector<16x1xf32>
    %25 = vector.extract_strided_slice %14 {offsets = [0, 0], sizes = [16, 256], strides = [1, 1]} : vector<24x256xf32> to vector<16x256xf32>
    %cst_18 = arith.constant 2.000000e+00 : f32
    %26 = vector.broadcast %cst_18 : f32 to vector<16x256xf32>
    %27 = arith.mulf %25, %26 : vector<16x256xf32>
    %c0_19 = arith.constant 0 : index
    %c0_20 = arith.constant 0 : index
    %28 = vector.load %arg6[%c0_19, %c0_20] : memref<2x256xf32, #tpu.memory_space<vmem>>, vector<1x256xf32>
    %c1_21 = arith.constant 1 : index
    %c0_22 = arith.constant 0 : index
    %29 = vector.load %arg6[%c1_21, %c0_22] : memref<2x256xf32, #tpu.memory_space<vmem>>, vector<1x256xf32>
    %30 = vector.shape_cast %23 : vector<16x1xi1> to vector<16x1xi1>
    %31 = vector.broadcast %30 : vector<16x1xi1> to vector<16x256xi1>
    %32 = vector.shape_cast %28 : vector<1x256xf32> to vector<1x256xf32>
    %33 = vector.broadcast %32 : vector<1x256xf32> to vector<16x256xf32>
    %34 = vector.shape_cast %29 : vector<1x256xf32> to vector<1x256xf32>
    %35 = vector.broadcast %34 : vector<1x256xf32> to vector<16x256xf32>
    %36 = arith.select %31, %33, %35 : vector<16x256xi1>, vector<16x256xf32>
    %37 = arith.addf %27, %36 : vector<16x256xf32>
    %cst_23 = arith.constant 8.000000e+00 : f32
    %38 = vector.broadcast %cst_23 : f32 to vector<16x256xf32>
    %39 = arith.mulf %37, %38 : vector<16x256xf32>
    %40 = arith.mulf %27, %27 : vector<16x256xf32>
    %41 = vector.broadcast %24 : vector<16x1xf32> to vector<16x256xf32>
    %42 = arith.mulf %40, %41 : vector<16x256xf32>
    %43 = vector.shape_cast %20 : vector<16x1xi1> to vector<16x1xi1>
    %44 = vector.broadcast %43 : vector<16x1xi1> to vector<16x256xi1>
    %45 = arith.select %44, %42, %25 : vector<16x256xi1>, vector<16x256xf32>
    %46 = vector.shape_cast %17 : vector<16x1xi1> to vector<16x1xi1>
    %47 = vector.broadcast %46 : vector<16x1xi1> to vector<16x256xi1>
    %48 = arith.select %47, %39, %45 : vector<16x256xi1>, vector<16x256xf32>
    %c0_24 = arith.constant 0 : index
    %c0_25 = arith.constant 0 : index
    %c0_26 = arith.constant 0 : index
    %49 = vector.load %arg8[%c0_24, %c0_25, %c0_26] : memref<1x24x256xf32, #tpu.memory_space<vmem>>, vector<1x16x256xf32>
    %50 = vector.shape_cast %49 : vector<1x16x256xf32> to vector<16x256xf32>
    %51 = vector.shape_cast %48 : vector<16x256xf32> to vector<1x16x256xf32>
    tpu.vector_store %arg8[%c0_24, %c0_25, %c0_26], %51 {strides = array<i32>} : memref<1x24x256xf32, #tpu.memory_space<vmem>>, vector<1x16x256xf32>,
    %52 = vector.extract_strided_slice %14 {offsets = [16, 0], sizes = [8, 256], strides = [1, 1]} : vector<24x256xf32> to vector<8x256xf32>
    %c0_27 = arith.constant 0 : index
    %c16 = arith.constant 16 : index
    %c0_28 = arith.constant 0 : index
    %53 = vector.load %arg8[%c0_27, %c16, %c0_28] : memref<1x24x256xf32, #tpu.memory_space<vmem>>, vector<1x8x256xf32>
    %54 = vector.shape_cast %53 : vector<1x8x256xf32> to vector<8x256xf32>
    %55 = vector.shape_cast %52 : vector<8x256xf32> to vector<1x8x256xf32>
    tpu.vector_store %arg8[%c0_27, %c16, %c0_28], %55 {strides = array<i32>} : memref<1x24x256xf32, #tpu.memory_space<vmem>>, vector<1x8x256xf32>,
    return
  }
  func.func @transform_0(%arg0: i32, %arg1: i32) -> (i32, i32, i32) {
    %c0_i32 = arith.constant 0 : i32
    %c0_i32_0 = arith.constant 0 : i32
    return %arg0, %c0_i32, %arg1 : i32, i32, i32
  }
  func.func @transform_1(%arg0: i32, %arg1: i32) -> (i32, i32) {
    %c0_i32 = arith.constant 0 : i32
    %c0_i32_0 = arith.constant 0 : i32
    %c0_i32_1 = arith.constant 0 : i32
    return %c0_i32, %c0_i32_0 : i32, i32
  }
  func.func @transform_2(%arg0: i32, %arg1: i32) -> (i32, i32) {
    %c0_i32 = arith.constant 0 : i32
    %c0_i32_0 = arith.constant 0 : i32
    %c0_i32_1 = arith.constant 0 : i32
    return %c0_i32, %c0_i32_0 : i32, i32
  }
  func.func @transform_3(%arg0: i32, %arg1: i32) -> (i32, i32) {
    %c0_i32 = arith.constant 0 : i32
    %c0_i32_0 = arith.constant 0 : i32
    %c0_i32_1 = arith.constant 0 : i32
    return %c0_i32, %c0_i32_0 : i32, i32
  }
  func.func @transform_4(%arg0: i32, %arg1: i32) -> (i32, i32) {
    %c0_i32 = arith.constant 0 : i32
    %c0_i32_0 = arith.constant 0 : i32
    return %c0_i32, %arg1 : i32, i32
  }
  func.func @transform_5(%arg0: i32, %arg1: i32) -> (i32, i32, i32) {
    %c0_i32 = arith.constant 0 : i32
    %c0_i32_0 = arith.constant 0 : i32
    return %arg0, %c0_i32, %arg1 : i32, i32, i32
  }
  func.func @transform_6(%arg0: i32, %arg1: i32) -> (i32, i32, i32) {
    %c0_i32 = arith.constant 0 : i32
    %c0_i32_0 = arith.constant 0 : i32
    return %arg0, %c0_i32, %arg1 : i32, i32, i32
  }
}

</mosaic_0001>

<bundles_post_ra>
// kernel: tpu_custom_call.1
= control target key start
LH: loop header
LB: loop body
LE: loop exit
PB: predicated region body
PF: predicated region fallthrough
CT: control target
= control target key end

     0   :  { %12 = vsyncpa [#allocation3], 0  ;;  %s1248_s0 = inlined_call_operand.vmem [shape: f32[2,4,256], index: 0, kind: input, shape index: {}]   ;;  %s1249_s1 = inlined_call_operand.vmem [shape: f32[24,4], index: 1, kind: input, shape index: {}]   ;;  %s1250_s2 = inlined_call_operand.vmem [shape: f32[24,1], index: 2, kind: input, shape index: {}]   ;;  %s1251_s3 = inlined_call_operand.vmem [shape: f32[24,4], index: 3, kind: input, shape index: {}]   ;;  %s1252_s4 = inlined_call_operand.vmem [shape: f32[2,256], index: 4, kind: input, shape index: {}]   ;;  %s1253_s5 = inlined_call_operand.hbm [shape: f32[2,24,256], index: 5, kind: output, shape index: {0}]   ;;  %s1254_s6 = inlined_call_operand.hbm [shape: f32[2,24,256], index: 6, kind: output, shape index: {1}]  }
   0x1   :  { %14 = vsyncpa [#allocation3 + $0x1], 0 }
   0x2   :  { %15 = vsyncpa [#allocation5], 0 }
   0x3   :  { %17 = vsyncpa [#allocation5 + $0x1], 0  ;;  %s1039_s21 = smov 0   ;;  %s1041_s22 = smov 0  }
   0x4   :  { %s1043_s23 = smov 0   ;;  %s1045_s24 = smov 0  }
   0x5   :  { %s1047_s25 = smov 0   ;;  %s1049_s26 = smov 0  }
   0x6 LB: > { %s752_s27 = sadd.s32 4294967295, %s993_s26   ;;  %s753_s28 = sadd.s32 4294967294, %s993_s26   ;;  %s993_s26 = sphi %s1049_s26, %s23_s26   ;;  %s989_s25 = sphi %s1047_s25, %s1261_s25   ;;  %s985_s24 = sphi %s1045_s24, %s1260_s24   ;;  %s981_s23 = sphi %s1043_s23, %s1259_s23   ;;  %s977_s22 = sphi %s1041_s22, %s1258_s22   ;;  %s973_s21 = sphi %s1039_s21, %s1257_s21  }
   0x7   : > { %s35_s29 = sadd.s32 1, %s989_s25  ;;  %s161_s30 = sadd.s32 1, %s981_s23 }
   0x8   : > { %p37_p0 = scmp.ge.s32.totalorder %s35_s29, 2  ;;  %p171_p1 = scmp.ne.s32.totalorder %s981_s23, %s977_s22 }
   0x9   : > { %p172_p2 = scmp.eq.s32.totalorder %s752_s27, 1  ;;  %p177_p3 = scmp.ne.s32.totalorder %s977_s22, %s973_s21 }
   0xa   : > { %s1263_s29 = smov (%p37_p0, %s35_s29), 0  ;;  %p178_p5 = scmp.eq.s32.totalorder %s753_s28, 1 }
   0xb   : > { %p1079_p4 = por %p172_p2, %p171_p1  ;;  %s156_s8 = ssub.s32 %s989_s25, %s1263_s29 }
   0xc   : > { %p757_p6 = scmp.ge.s32.totalorder %s993_s26, 1  ;;  %p159_p7 = scmp.eq.s32.totalorder %s156_s8, 0 }
   0xd   : > { %p1086_p8 = por %p178_p5, %p177_p3  ;;  %p255_p9 = scmp.lt.s32.totalorder %s993_s26, 3 }
   0xe   : > { %s1092_s10 = scalar_select %p159_p7, %s981_s23, %s161_s30  }
   0xf   : > { %p256_p10 = pnand %p757_p6, %p255_p9 }
  0x10   : > { %p300_p11 = scmp.lt.s32.totalorder (!%p256_p10), %s985_s24, 1  ;;  %v995_v0 = vmov (!%p256_p10), 0.0   ;;  %v321_v1 = vld [vmem:[%s1250_s2] sm:$0xff] (!%p256_p10)  ;;  %v996_v2 = vmov (!%p256_p10), 0   ;;  %v323_v3 = vld [vmem:[%s1250_s2 + $0x10] sm:$0xff] (!%p256_p10)  ;;  %v322_v5 = vld [vmem:[%s1250_s2 + $0x8] sm:$0xff] (!%p256_p10) }
  0x11   : > { %259 = sbr.rel (%p256_p10) target bundleno = 306 (0x132), region = 40  ;;  %420 = vmatprep.mubr.f32.mxu0 (!%p256_p10), %v995_v0  ;;  %426 = vmatprep.mubr.f32.mxu1 (!%p256_p10), %v995_v0  ;;  %v481_v4 = vld [vmem:[%s1251_s3] sm:$0xff] (!%p256_p10)  ;;  %v482_v7 = vld [vmem:[%s1251_s3 + $0x8] sm:$0xff] (!%p256_p10)  ;;  %vm351_vm1 = vcmask (!%p256_p10), 1043456   ;;  %v997_v10 = vmov (!%p256_p10), 2   ;;  %vm341_vm2 = vcmask (!%p256_p10), 31744  }
  0x12   : > { %849 = vset.pattern.permute.xlu0 (!%p256_p10), %v996_v2  ;;  %850 = vset.pattern.permute.xlu1 (!%p256_p10), %v996_v2  ;;  %vm483_vm0 = vcmp.gt.f32.partialorder (!%p256_p10), %v481_v4, 0.5  ;;  %v317_v11 = vld [vmem:[%s1249_s1] sm:$0xff] (!%p256_p10)  ;;  %v318_v12 = vld [vmem:[%s1249_s1 + $0x8] sm:$0xff] (!%p256_p10)  ;;  %vm484_vm3 = vcmp.gt.f32.partialorder (!%p256_p10), %v482_v7, 0.5  ;;  %v319_v14 = vld [vmem:[%s1249_s1 + $0x10] sm:$0xff] (!%p256_p10)  ;;  %v998_v15 = vmov (!%p256_p10), 3  }
  0x13   : > { %326 = vperm.xlu0 (!%p256_p10), %849, %v321_v1   ;;  %336 = vperm.xlu1 (!%p256_p10), %850, %v323_v3   ;;  %v492_v6 = vsel (!%p256_p10), %vm483_vm0, 1, %v996_v2  ;;  %v493_v13 = vsel (!%p256_p10), %vm484_vm3, 1, %v996_v2  ;;  %v999_v16 = vmov (!%p256_p10), 1   ;;  %s780_s20 = smul.u32 (!%p256_p10), 768, %s985_s24  ;;  %s1000_s14 = smov (!%p256_p10), [#allocation2]  }
  0x14   : > { %s887_s15 = sshll.u32 (!%p256_p10), %s1000_s14, 4  ;;  %s888_s15 = int_to_ptr.vmem [resolvable:$false] %s887_s15 }
  0x15   : > { %s1140_s11 = scalar_lea.hbm (!%p256_p10), %s1253_s5, %s780_s20  ;;  %s889_s16 = scalar_lea.vmem (!%p256_p10), %s888_s15, 1536 }
  0x17   : > { %331 = vperm.xlu0 (!%p256_p10), %849, %v322_v5   ;;  %851 = vset.pattern.permute.xlu1 (!%p256_p10), %v997_v10 }
  0x18   : > { %s301_s13 = scalar_select %p300_p11, %s985_s24, 1  ;;  %495 = vperm.xlu1 %851, %v492_v6  }
  0x1a   : > { %s776_s18 = sshll.u32 %s301_s13, 3 }
  0x1b   : > { %s307_s30 = scalar_lea.vmem %s1248_s0, %s776_s18  ;;  %852 = vset.pattern.permute.xlu0 %v997_v10  ;;  %s1127_s18 = sand.u32 1, %s977_s22  }
  0x1c   : > { %v320_v8 = vld [vmem:[%s307_s30] sm:$0xff]  ;;  %853 = vset.pattern.permute.xlu1 %v998_v15  ;;  %498 = vperm.xlu0 %852, %v493_v13   ;;  %s779_s19 = smul.u32 48, %s1127_s18  ;;  %s585_s12 = scalar_lea.sflag [#allocation3], %s1127_s18 }
  0x1d   : > { %v340_v9 = vcombine.high %v320_v8, %v320_v8  ;;  %542 = vperm.xlu1 %853, %v481_v4  }
  0x1e   : > { %s291_s27 = scalar_lea.vmem [#allocation2], %s779_s19 }
  0x1f   : > { %760 = vmatprep.subr.msk.mxu0 %vm351_vm1, %v340_v9  ;;  %777 = vmatprep.subr.msk.mxu1 %vm351_vm1, %v340_v9  ;;  %s605_s28 = sshll.u32 %s291_s27, 4  ;;  %s1133_s28 = int_to_ptr.vmem [resolvable:$true] %s605_s28 }
  0x20   : > { %761 = vmatpush1.msk.msra.mxu0 %vm351_vm1, %v320_v8  ;;  %778 = vmatpush1.msk.msra.mxu1 %vm351_vm1, %v320_v8  ;;  %s883_s13 = scalar_lea.vmem %s1133_s28, 768  ;;  %p890_p1 = scmp.lt.s32.totalorder %s1133_s28, %s888_s15 }
  0x21   : > { %762 = vmatmul.mubr.msk.f32.vlgmr.msra.gmra.mrb[0].mxu0 %vm341_vm2, %v317_v11  ;;  %763 = vmatmul.mubr.msk.f32.vlgmr.msra.gmra.mrb[0].mxu1 %vm341_vm2, %v318_v12  ;;  %p884_p12 = scmp.ne.s32.totalorder %s1133_s28, %s883_s13  ;;  %p891_p2 = scmp.lt.s32.totalorder %s889_s16, %s883_s13 }
  0x22   : > { %432 = vmatprep.mubr.f32.mxu1 %v995_v0  ;;  %547 = vperm.xlu1 %853, %v482_v7  }
  0x23   : > { %854 = vset.pattern.permute.xlu0 %v999_v16  ;;  %p885_p13 = pnand %p884_p12, %p1079_p4  ;;  %p892_p3 = por %p891_p2, %p890_p1 }
  0x24   : > { %555 = vperm.xlu0 %854, %v492_v6  }
  0x25   : > { %764 = vmatmul.mubr.msk.f32.gmra.mrb[2].mxu1 %vm341_vm2, %v319_v14  ;;  %p886_p0 = pneg %p885_p13 }
  0x26   : > { %855 = vset.pattern.permute.xlu1 %v999_v16 }
  0x27   : > { %558 = vperm.xlu1 %855, %v493_v13   ;;  %p893_p5 = pnand %p892_p3, %p886_p0 }
  0x28   : > { %857 = vset.pattern.permute.xlu0 %v996_v2 }
  0x29   : > { %570 = vperm.xlu0 %857, %v493_v13  }
  0x2b   : > { %856 = vset.pattern.permute.xlu1 %v996_v2 }
  0x2c   : > { %567 = vperm.xlu1 %856, %v492_v6  }
  0x92   : > { %v327_v17 = vpop.permute.xlu0 %326  ;;  %v337_v19 = vpop.permute.xlu1 %336 }
  0x96   : > { %v332_v18 = vpop.permute.xlu0 %331 }
  0x97   : > { %v1142_v37 = vpop.permute.xlu1 %495 }
  0xf4   : > { %v422_v20 = vpop.f32.mrb[0].mxu0  ;;  %v428_v21 = vpop.f32.mrb[0].mxu1 }
  0xf5   : > { %v423_v22 = vadd.f32 %v422_v20, %v327_v17  ;;  %v429_v23 = vadd.f32 %v428_v21, %v332_v18  ;;  %v424_v24 = vpop.f32.mrb[1].mxu0  ;;  %v430_v25 = vpop.f32.mrb[1].mxu1 }
  0xf6   : > { %v425_v26 = vadd.f32 %v424_v24, %v327_v17  ;;  %v431_v27 = vadd.f32 %v430_v25, %v332_v18 }
  0xf7   : > { %439 = vst [vmem:[%s291_s27] sm:$0xff] %v423_v22  ;;  %v765_v28 = vmul.f32 -1.442695, %v423_v22  ;;  %441 = vst [vmem:[%s291_s27 + $0x10] sm:$0xff] %v429_v23  ;;  %v767_v29 = vmul.f32 -1.442695, %v429_v23 }
  0xf8   : > { %440 = vst [vmem:[%s291_s27 + $0x8] sm:$0xff] %v425_v26  ;;  %v766_v30 = vmul.f32 -1.442695, %v425_v26  ;;  %442 = vst [vmem:[%s291_s27 + $0x18] sm:$0xff] %v431_v27  ;;  %v768_v31 = vmul.f32 -1.442695, %v431_v27 }
  0xf9   : > { %v434_v32 = vpop.f32.mrb[2].mxu1  ;;  %859 = vpow2.f32 %v765_v28 }
  0xfa   : > { %v435_v33 = vadd.f32 %v434_v32, %v337_v19  ;;  %v436_v34 = vpop.f32.mrb[3].mxu1  ;;  %861 = vpow2.f32 %v767_v29 }
  0xfb   : > { %v437_v35 = vadd.f32 %v436_v34, %v337_v19  ;;  %863 = vpow2.f32 %v766_v30 }
  0xfc   : > { %443 = vst [vmem:[%s291_s27 + $0x20] sm:$0xff] %v435_v33  ;;  %v769_v36 = vmul.f32 -1.442695, %v435_v33  ;;  %865 = vpow2.f32 %v768_v31 }
  0xfd   : > { %444 = vst [vmem:[%s291_s27 + $0x28] sm:$0xff] %v437_v35  ;;  %v770_v38 = vmul.f32 -1.442695, %v437_v35 }
  0xfe   : > { %867 = vpow2.f32 %v769_v36 }
  0xff   : > { %896 = shalt.err (!%p893_p5)
}
 0x100   : > { %s897_s17 = scalar_lea.hbm %s1140_s11, 768  ;;  %s901_s8 = scalar_lea.hbm %s1253_s5, 1536 }
 0x101   : > { %p898_p6 = scmp.ne.s32.totalorder %s1140_s11, %s897_s17  ;;  %p902_p10 = scmp.lt.u32.totalorder %s1140_s11, %s1253_s5 }
 0x102   : > { %p903_p11 = scmp.lt.u32.totalorder %s901_s8, %s897_s17  ;;  %p905_p13 = scmp.lt.u32.totalorder %s897_s17, %s1140_s11 }
 0x103   : > { %p899_p7 = pnand %p898_p6, %p1079_p4 }
 0x104   : > { %p904_p12 = por %p903_p11, %p902_p10 }
 0x105   : > { %p900_p9 = pneg %p899_p7 }
 0x106   : > { %p906_p0 = por %p905_p13, %p904_p12 }
 0x108   : > { %p907_p1 = pnand %p906_p0, %p900_p9 }
 0x10a   : > { %910 = shalt.err (!%p907_p1)
}
 0x10b   : > { %s1001_s13 = smov 256   ;;  %s1002_s16 = smov 16   ;;  %869 = vpow2.f32 %v770_v38  ;;  %v503_v39 = vlaneseq  ;;  %v1171_v40 = vpop.permute.xlu1 %542  ;;  %v860_v41 = vpop.eup %859  ;;  %v489_v58 = vld [vmem:[%s1252_s4] ss:$2 sm:$0x3]  ;;  %vm500_vm4 = vcmp.eq.s32.totalorder %v1142_v37, 1 }
 0x10c   : > { %782 = dma.vmem_to_hbm [thread:$0]  (%p1079_p4), %s1133_s28, 768, %s1140_s11, %s585_s12, %s1001_s13, %s1001_s13, %s1002_s16   ;;  %v862_v42 = vpop.eup %861  ;;  %v463_v43 = vadd.f32 1.0, %v860_v41  ;;  %v499_v44 = vpop.permute.xlu0 %498 }
 0x10d   : > { %v864_v45 = vpop.eup %863  ;;  %v465_v46 = vadd.f32 1.0, %v862_v42  ;;  %v504_v47 = vshrl.u32 %v503_v39, 7  ;;  %v771_v59 = vld [vmem:[%s1252_s4 + $0x1] ss:$2 sm:$0x3]  ;;  %vm501_vm5 = vcmp.eq.s32.totalorder %v499_v44, 1  ;;  %s1196_s14 = scalar_lea.hbm %s1254_s6, %s780_s20 }
 0x10e   : > { %v866_v48 = vpop.eup %865  ;;  %871 = vrcp.f32 %v463_v43  ;;  %v464_v49 = vadd.f32 1.0, %v864_v45  ;;  %s298_s27 = scalar_lea.vmem [#allocation4], %s779_s19  ;;  %s590_s15 = scalar_lea.sflag [#allocation5], %s1127_s18 }
 0x10f   : > { %v868_v50 = vpop.eup %867  ;;  %873 = vrcp.f32 %v465_v46  ;;  %v466_v51 = vadd.f32 1.0, %v866_v48  ;;  %v548_v52 = vpop.permute.xlu1 %547  ;;  %v505_v56 = vsub.s32 0, %v504_v47  ;;  %v509_v57 = vsub.s32 1, %v504_v47  ;;  %s623_s30 = sshll.u32 %s298_s27, 4  ;;  %s1003_s11 = smov [#allocation4]   ;;  %s1189_s30 = int_to_ptr.vmem [resolvable:$true] %s623_s30 }
 0x110   : > { %875 = vrcp.f32 %v464_v49  ;;  %v467_v54 = vadd.f32 1.0, %v868_v50  ;;  %v556_v60 = vpop.permute.xlu0 %555  ;;  %s911_s28 = scalar_lea.vmem %s1189_s30, 768  ;;  %s915_s12 = sshll.u32 %s1003_s11, 4  ;;  %s916_s12 = int_to_ptr.vmem [resolvable:$false] %s915_s12 }
 0x111   : > { %877 = vrcp.f32 %v466_v51  ;;  %v506_v62 = vrot.slane %v489_v58, %v505_v56  ;;  %v510_v63 = vrot.slane %v489_v58, %v509_v57  ;;  %v517_v0 = vrot.slane %v771_v59, %v505_v56  ;;  %p912_p2 = scmp.ne.s32.totalorder %s1189_s30, %s911_s28  ;;  %s917_s17 = scalar_lea.vmem %s916_s12, 1536 }
 0x112   : > { %879 = vrcp.f32 %v467_v54  ;;  %v521_v1 = vrot.slane %v771_v59, %v509_v57  ;;  %vm560_vm6 = vcmp.eq.s32.totalorder %v556_v60, 1  ;;  %p918_p6 = scmp.lt.s32.totalorder %s1189_s30, %s916_s12  ;;  %p919_p7 = scmp.lt.s32.totalorder %s917_s17, %s911_s28 }
 0x113   : > { %v559_v61 = vpop.permute.xlu1 %558  ;;  %v524_v6 = vsel %vm500_vm4, %v506_v62, %v517_v0  ;;  %v526_v11 = vsel %vm501_vm5, %v506_v62, %v517_v0  ;;  %p913_p3 = pnand %p912_p2, %p1079_p4 }
 0x114   : > { %v571_v3 = vpop.permute.xlu0 %570  ;;  %v525_v7 = vsel %vm500_vm4, %v510_v63, %v521_v1  ;;  %v527_v12 = vsel %vm501_vm5, %v510_v63, %v521_v1  ;;  %vm561_vm9 = vcmp.eq.s32.totalorder %v559_v61, 1  ;;  %p920_p9 = por %p919_p7, %p918_p6 }
 0x115   : > { %v870_v53 = vpop.eup %869  ;;  %vm573_vm7 = vcmp.eq.s32.totalorder %v571_v3, 1  ;;  %p914_p5 = pneg %p913_p3 }
 0x116   : > { %v468_v55 = vadd.f32 1.0, %v870_v53 }
 0x117   : > { %v568_v8 = vpop.permute.xlu1 %567  ;;  %p921_p10 = pnand %p920_p9, %p914_p5 }
 0x118   : > { %881 = vrcp.f32 %v468_v55  ;;  %v872_v2 = vpop.eup %871  ;;  %vm572_vm8 = vcmp.eq.s32.totalorder %v568_v8, 1 }
 0x119   : > { %v874_v4 = vpop.eup %873  ;;  %v485_v5 = vmul.f32 2.0, %v872_v2 }
 0x11a   : > { %v876_v9 = vpop.eup %875  ;;  %v487_v10 = vmul.f32 2.0, %v874_v4 }
 0x11b   : > { %v878_v13 = vpop.eup %877  ;;  %v486_v14 = vmul.f32 2.0, %v876_v9  ;;  %v528_v15 = vadd.f32 %v524_v6, %v485_v5  ;;  %v536_v16 = vmul.f32 %v485_v5, %v485_v5 }
 0x11c   : > { %v880_v17 = vpop.eup %879  ;;  %v488_v18 = vmul.f32 2.0, %v878_v13  ;;  %v538_v19 = vmul.f32 %v487_v10, %v487_v10  ;;  %v530_v20 = vadd.f32 %v526_v11, %v487_v10 }
 0x11d   : > { %v529_v22 = vadd.f32 %v525_v7, %v486_v14  ;;  %v532_v23 = vmul.f32 8.0, %v528_v15  ;;  %v537_v24 = vmul.f32 %v486_v14, %v486_v14  ;;  %v550_v25 = vmul.f32 %v1171_v40, %v536_v16  ;;  %582 = vst [vmem:[%s298_s27 + $0x20] sm:$0xff] %v880_v17 }
 0x11e   : > { %v539_v26 = vmul.f32 %v488_v18, %v488_v18  ;;  %v552_v27 = vmul.f32 %v548_v52, %v538_v19  ;;  %v531_v28 = vadd.f32 %v527_v12, %v488_v18  ;;  %v534_v29 = vmul.f32 8.0, %v530_v20 }
 0x11f   : > { %v533_v30 = vmul.f32 8.0, %v529_v22  ;;  %v551_v31 = vmul.f32 %v1171_v40, %v537_v24  ;;  %v562_v32 = vsel %vm560_vm6, %v550_v25, %v872_v2 }
 0x120   : > { %v553_v33 = vmul.f32 %v548_v52, %v539_v26  ;;  %v535_v34 = vmul.f32 8.0, %v531_v28  ;;  %v564_v35 = vsel %vm561_vm9, %v552_v27, %v874_v4  ;;  %v574_v36 = vsel %vm572_vm8, %v532_v23, %v562_v32 }
 0x121   : > { %v563_v37 = vsel %vm560_vm6, %v551_v31, %v876_v9  ;;  %578 = vst [vmem:[%s298_s27] sm:$0xff] %v574_v36  ;;  %v576_v38 = vsel %vm573_vm7, %v534_v29, %v564_v35 }
 0x122   : > { %v882_v21 = vpop.eup %881  ;;  %v565_v39 = vsel %vm561_vm9, %v553_v33, %v878_v13  ;;  %v575_v41 = vsel %vm572_vm8, %v533_v30, %v563_v37  ;;  %580 = vst [vmem:[%s298_s27 + $0x10] sm:$0xff] %v576_v38 }
 0x123   : > { %583 = vst [vmem:[%s298_s27 + $0x28] sm:$0xff] %v882_v21  ;;  %579 = vst [vmem:[%s298_s27 + $0x8] sm:$0xff] %v575_v41  ;;  %v577_v40 = vsel %vm573_vm7, %v535_v34, %v565_v39 }
 0x124   : > { %581 = vst [vmem:[%s298_s27 + $0x18] sm:$0xff] %v577_v40 }
 0x125   : > { %924 = shalt.err (!%p921_p10)
}
 0x126   : > { %s925_s24 = scalar_lea.hbm %s1196_s14, 768  ;;  %s929_s19 = scalar_lea.hbm %s1254_s6, 1536 }
 0x127   : > { %p926_p11 = scmp.ne.s32.totalorder %s1196_s14, %s925_s24  ;;  %p930_p0 = scmp.lt.u32.totalorder %s1196_s14, %s1254_s6 }
 0x128   : > { %p931_p1 = scmp.lt.u32.totalorder %s929_s19, %s925_s24  ;;  %p933_p3 = scmp.lt.u32.totalorder %s925_s24, %s1196_s14 }
 0x129   : > { %p927_p12 = pnand %p926_p11, %p1079_p4 }
 0x12a   : > { %p932_p2 = por %p931_p1, %p930_p0 }
 0x12b   : > { %p928_p13 = pneg %p927_p12 }
 0x12c   : > { %p934_p5 = por %p933_p3, %p932_p2 }
 0x12e   : > { %p935_p6 = pnand %p934_p5, %p928_p13 }
 0x130   : > { %938 = shalt.err (!%p935_p6)
}
 0x131   : > { %783 = dma.vmem_to_hbm [thread:$0]  (%p1079_p4), %s1189_s30, 768, %s1196_s14, %s590_s15, %s1001_s13, %s1001_s13, %s1002_s16  }
 0x132 PF: > { %p793_p7 = scmp.ge.s32.totalorder %s993_s26, 2  ;;  %s638_s28 = sand.u32 1, %s973_s21  }
 0x133   : > { %s639_s12 = scalar_lea.sflag [#allocation3], %s638_s28 }
 0x134   : > { %p787_p9 = pnand %p793_p7, %p1086_p8 }
 0x136   : > { %964 = dma.done.wait (!%p787_p9), %s639_s12, 768  }
 0x137   : > { %966 = vsyncadd (!%p787_p9), %s639_s12, 4294966528  ;;  %s648_s7 = scalar_lea.sflag [#allocation5], %s638_s28 }
 0x138   : > { %968 = dma.done.wait (!%p787_p9), %s648_s7, 768  }
 0x139   : > { %970 = vsyncadd (!%p787_p9), %s648_s7, 4294966528  ;;  %s23_s26 = sadd.s32 1, %s993_s26   ;;  %s1257_s21 = smov %s977_s22 }
 0x13a   : > { %p20_p10 = scmp.ge.s32.totalorder %s23_s26, 4   ;;  %s1258_s22 = smov %s981_s23 }
 0x13b   : > { %s1259_s23 = smov %s1092_s10  ;;  %s1260_s24 = smov %s989_s25 }
 0x13c   : > { %s1261_s25 = smov %s1263_s29  ;;  %22 = sbr.rel (!%p20_p10) target bundleno = 6 (0x6), region = 96 }
 0x143   :  { %653 = vsyncpa [#allocation3], 1 }
 0x144   :  { %655 = vsyncpa [#allocation3 + $0x1], 1 }
 0x145   :  { %656 = vsyncpa [#allocation5], 1 }
 0x146   :  { %658 = vsyncpa [#allocation5 + $0x1], 1 }

</bundles_post_ra>
